<compile_context>
chip_gen: v6e
topology: v6e:2x2x1
jax: 0.10.0
libtpu: 0.0.40
codegen_flags: <defaults>
</compile_context>

<pallas_src>
import functools

import jax
import jax.numpy as jnp
from jax import lax
from jax.experimental import pallas as pl
from jax.experimental.pallas import tpu as pltpu

KD = KH = KW = 3          # kernel_size = (3, 3, 3), dilation = 1 -> "same" padding of 1
KVOL = KD * KH * KW       # 27


def _vmem_capacity_bytes():
    try:
        return int(pltpu.get_tpu_info().vmem_capacity_bytes)
    except Exception:
        return 64 << 20   # conservative fallback (v7x per-core VMEM)


_VMEM_CAP = _vmem_capacity_bytes()
_VMEM_BUDGET = max(16 << 20, int(_VMEM_CAP * 0.75))   # tile-selection budget
_VMEM_LIMIT_CAP = _VMEM_CAP - (2 << 20)                # never declare above this


def _round_up(x, m):
    return (x + m - 1) // m * m


# --------------------------------------------------------------------------------------
# Kernels
# --------------------------------------------------------------------------------------
def _matmul_bias_relu_kernel(p_ref, w_ref, b_ref, o_ref):
    """Small-Cin path: pure lane-dense matmul + folded-BN bias + ReLU.

    p_ref: (1, Kp, TS)  bf16 im2col patch tile (TS is a multiple of 128 -> dense lanes)
    w_ref: (Cout, Kp)   bf16 folded conv weights (K zero-padded to Kp)
    b_ref: (Cout, 1)    f32 folded BN bias
    o_ref: (1, Cout, TS) bf16
    """
    acc = jax.lax.dot_general(
        w_ref[...], p_ref[0],
        dimension_numbers=(((1,), (0,)), ((), ())),
        preferred_element_type=jnp.float32)            # (Cout, TS) f32
    o_ref[0] = jnp.maximum(acc + b_ref[...], 0.0).astype(o_ref.dtype)


def _fused_cbr_kernel(xw_ref, w_ref, b_ref, o_ref, *, H, W, TD):
    """Fused path: in-kernel im2col over a depth window (TD + 2 halo slabs).

    xw_ref: (1, 1, TD+2, Hp, Wp, Cin) bf16 depth window of the zero-padded NDHWC volume
    w_ref:  (Cout, 27*Cin) bf16, columns ordered (kd, kh, kw, cin) with cin fastest
    b_ref:  (Cout, 1) f32 folded BN bias
    o_ref:  (1, Cout, TD*H*W) bf16
    """
    Cin = xw_ref.shape[-1]
    Cout = w_ref.shape[0]
    HW = H * W
    acc = jnp.zeros((Cout, TD * HW), jnp.float32)
    # Chunk the contraction per kd (3 matmuls, K = 9*Cin each): at most 9 tap slices are
    # live at once (instead of 27), each sliced directly from the ref (no xwin value).
    for kd in range(KD):
        cols = []
        for kh in range(KH):
            for kw in range(KW):
                tap = xw_ref[0, 0, kd:kd + TD, kh:kh + H, kw:kw + W, :]
                cols.append(tap.reshape(TD * HW, Cin))
        patch_kd = jnp.concatenate(cols, axis=-1)       # (TD*HW, 9*Cin) bf16
        w_kd = w_ref[:, kd * 9 * Cin:(kd + 1) * 9 * Cin]
        acc = acc + jax.lax.dot_general(
            w_kd, patch_kd,
            dimension_numbers=(((1,), (1,)), ((), ())),
            preferred_element_type=jnp.float32)          # (Cout, TD*HW) f32
    o_ref[0] = jnp.maximum(acc + b_ref[...], 0.0).astype(o_ref.dtype)


# --------------------------------------------------------------------------------------
# VMEM accounting + tile selection (counts patch, tap copies and f32 accumulator)
# --------------------------------------------------------------------------------------
def _need_small(ts, Kp, Cout, ob):
    in_blk = Kp * ts * 2
    w_blk = Cout * Kp * 2
    out_blk = Cout * ts * ob
    live = Cout * ts * 4 + Kp * ts * 2                   # f32 acc + patch value
    return 2 * in_blk + 2 * w_blk + 2 * out_blk + live + (2 << 20)


def _pick_spatial_tile(SPp, Kp, Cout, ob, budget):
    m = SPp // 128
    for d in range(m, 0, -1):                            # largest tile that fits
        if m % d == 0 and _need_small(128 * d, Kp, Cout, ob) <= budget:
            return 128 * d
    return 128


def _need_fused(td, H, W, Hp, Wp, Cin, Cout, ob):
    hw = H * W
    win_blk = (td + 2) * Hp * Wp * Cin * 2
    w_blk = Cout * KVOL * Cin * 2
    out_blk = Cout * td * hw * ob
    live = 2 * td * hw * 9 * Cin * 2 + Cout * td * hw * 4   # per-kd patch + taps + f32 acc
    return 2 * win_blk + 2 * w_blk + 2 * out_blk + live + (2 << 20)


def _pick_depth_tile(D, H, W, Hp, Wp, Cin, Cout, ob, budget):
    hw = H * W
    cands = [td for td in range(D, 0, -1)
             if D % td == 0 and (td == D or (td * hw) % 128 == 0)]
    for td in cands:                                     # descending: biggest that fits
        if _need_fused(td, H, W, Hp, Wp, Cin, Cout, ob) <= budget:
            return td
    return cands[-1]                                     # smallest legal tile


# --------------------------------------------------------------------------------------
# Wrappers
# --------------------------------------------------------------------------------------
def _fold_bn(weight, gamma, beta, mean, var, eps):
    scale = gamma / jnp.sqrt(var + eps)
    bias = (beta - mean * scale).astype(jnp.float32).reshape(-1, 1)
    w_folded = weight * scale[:, None, None, None, None]
    return w_folded, bias


@functools.partial(jax.jit, static_argnames=("Kp", "SPp", "TS", "out_dtype", "vmem_limit"))
def _cbr_small_cin(x, weight, gamma, beta, mean, var, eps, *,
                   Kp, SPp, TS, out_dtype, vmem_limit):
    N, Cin, D, H, W = x.shape
    Cout = weight.shape[0]
    SP = D * H * W
    K = KVOL * Cin

    w_f, bias = _fold_bn(weight, gamma, beta, mean, var, eps)
    w2 = jnp.transpose(w_f, (0, 2, 3, 4, 1)).reshape(Cout, K).astype(jnp.bfloat16)
    w2 = jnp.pad(w2, ((0, 0), (0, Kp - K)))

    # HBM-side im2col (accepted ~27x read amplification at tiny Cin per review):
    # patch[n, tap*Cin + ci, d*HW + h*W + w] = x_padded[n, ci, d+kd, h+kh, w+kw]
    xp = jnp.pad(x.astype(jnp.bfloat16), ((0, 0), (0, 0), (1, 1), (1, 1), (1, 1)))
    taps = []
    for kd in range(KD):
        for kh in range(KH):
            for kw in range(KW):
                taps.append(lax.slice(xp, (0, 0, kd, kh, kw),
                                      (N, Cin, kd + D, kh + H, kw + W)))
    patch = jnp.stack(taps, axis=1).reshape(N, K, SP)
    patch = jnp.pad(patch, ((0, 0), (0, Kp - K), (0, SPp - SP)))

    out = pl.pallas_call(
        _matmul_bias_relu_kernel,
        out_shape=jax.ShapeDtypeStruct((N, Cout, SPp), out_dtype),
        grid_spec=pltpu.PrefetchScalarGridSpec(
            num_scalar_prefetch=0,
            grid=(N, SPp // TS),
            in_specs=[
                pl.BlockSpec((1, Kp, TS), lambda n, s: (n, 0, s)),
                pl.BlockSpec((Cout, Kp), lambda n, s: (0, 0)),
                pl.BlockSpec((Cout, 1), lambda n, s: (0, 0)),
            ],
            out_specs=pl.BlockSpec((1, Cout, TS), lambda n, s: (n, 0, s)),
        ),
        compiler_params=pltpu.CompilerParams(
            dimension_semantics=("parallel", "parallel"),
            vmem_limit_bytes=vmem_limit),
    )(patch, w2, bias)

    return out[:, :, :SP].reshape(N, Cout, D, H, W)


@functools.partial(jax.jit, static_argnames=("TD", "out_dtype", "vmem_limit"))
def _cbr_fused(x, weight, gamma, beta, mean, var, eps, *, TD, out_dtype, vmem_limit):
    N, Cin, D, H, W = x.shape
    Cout = weight.shape[0]
    HW = H * W
    Hp, Wp = H + 2, W + 2
    nT = D // TD
    K = KVOL * Cin

    w_f, bias = _fold_bn(weight, gamma, beta, mean, var, eps)
    w2 = jnp.transpose(w_f, (0, 2, 3, 4, 1)).reshape(Cout, K).astype(jnp.bfloat16)

    # NCDHW -> zero-padded NDHWC (bf16), then TD-depth windows with +-1 halo slabs so the
    # per-step input block is proportional to TD (no full-volume VMEM residency).
    xp = jnp.pad(jnp.transpose(x, (0, 2, 3, 4, 1)).astype(jnp.bfloat16),
                 ((0, 0), (1, 1), (1, 1), (1, 1), (0, 0)))
    if nT == 1:
        xw = xp[:, None]                                            # (N, 1, D+2, Hp, Wp, Cin)
    else:
        xw = jnp.stack([xp[:, t * TD:t * TD + TD + 2] for t in range(nT)], axis=1)

    out = pl.pallas_call(
        functools.partial(_fused_cbr_kernel, H=H, W=W, TD=TD),
        out_shape=jax.ShapeDtypeStruct((N, Cout, D * HW), out_dtype),
        grid_spec=pltpu.PrefetchScalarGridSpec(
            num_scalar_prefetch=0,
            grid=(N, nT),
            in_specs=[
                pl.BlockSpec((1, 1, TD + 2, Hp, Wp, Cin),
                             lambda n, t: (n, t, 0, 0, 0, 0)),
                pl.BlockSpec((Cout, K), lambda n, t: (0, 0)),
                pl.BlockSpec((Cout, 1), lambda n, t: (0, 0)),
            ],
            out_specs=pl.BlockSpec((1, Cout, TD * HW), lambda n, t: (n, 0, t)),
        ),
        compiler_params=pltpu.CompilerParams(
            dimension_semantics=("parallel", "parallel"),
            vmem_limit_bytes=vmem_limit),
    )(xw, w2, bias)

    return out.reshape(N, Cout, D, H, W)


def cbr_forward(x, weight, gamma, beta, running_mean, running_var,
                eps=1e-3, out_dtype=jnp.bfloat16):
    """x: (N, Cin, D, H, W) f32.  Returns (N, Cout, D, H, W) in `out_dtype` (default bf16)."""
    N, Cin, D, H, W = x.shape
    Cout = weight.shape[0]
    ob = jnp.dtype(out_dtype).itemsize
    eps = jnp.float32(eps)

    if Cin <= 8:
        # Copy-bound regime: im2col in the wrapper, kernel is a lane-dense matmul.
        K = KVOL * Cin
        Kp = _round_up(K, 128)
        SP = D * H * W
        SPp = _round_up(SP, 128)
        TS = _pick_spatial_tile(SPp, Kp, Cout, ob, _VMEM_BUDGET)
        vmem_limit = int(min(max(_need_small(TS, Kp, Cout, ob), 16 << 20), _VMEM_LIMIT_CAP))
        return _cbr_small_cin(x, weight, gamma, beta, running_mean, running_var, eps,
                              Kp=Kp, SPp=SPp, TS=TS, out_dtype=out_dtype,
                              vmem_limit=vmem_limit)
    else:
        Hp, Wp = H + 2, W + 2
        TD = _pick_depth_tile(D, H, W, Hp, Wp, Cin, Cout, ob, _VMEM_BUDGET)
        vmem_limit = int(min(max(_need_fused(TD, H, W, Hp, Wp, Cin, Cout, ob), 16 << 20),
                             _VMEM_LIMIT_CAP))
        return _cbr_fused(x, weight, gamma, beta, running_mean, running_var, eps,
                          TD=TD, out_dtype=out_dtype, vmem_limit=vmem_limit)


def cbr_reference(x, weight, gamma, beta, mean, var, eps=1e-3):
    """f32 reference on the same bf16-quantized activations/folded weights the kernel uses."""
    scale = gamma / jnp.sqrt(var + eps)
    bias = beta - mean * scale
    w_f = (weight * scale[:, None, None, None, None]).astype(jnp.bfloat16).astype(jnp.float32)
    xq = x.astype(jnp.bfloat16).astype(jnp.float32)
    y = lax.conv_general_dilated(
        xq, w_f, window_strides=(1, 1, 1),
        padding=((1, 1), (1, 1), (1, 1)),
        dimension_numbers=("NCDHW", "OIDHW", "NCDHW"),
        precision=lax.Precision.HIGHEST)
    y = y + bias[None, :, None, None, None]
    return jnp.maximum(y, 0.0)


if __name__ == "__main__":
    def _run_case(N, Cin, Cout, D, H, W):
        key = jax.random.PRNGKey(0)
        kx, kw_, kg, kb, km, kv = jax.random.split(key, 6)
        x = jax.random.normal(kx, (N, Cin, D, H, W), dtype=jnp.float32)
        weight = 0.1 * jax.random.normal(kw_, (Cout, Cin, KD, KH, KW), dtype=jnp.float32)
        gamma = 1.0 + 0.1 * jax.random.normal(kg, (Cout,), dtype=jnp.float32)
        beta = 0.1 * jax.random.normal(kb, (Cout,), dtype=jnp.float32)
        mean = 0.05 * jax.random.normal(km, (Cout,), dtype=jnp.float32)
        var = 1.0 + 0.1 * jnp.abs(jax.random.normal(kv, (Cout,), dtype=jnp.float32))

        out = jax.block_until_ready(cbr_forward(x, weight, gamma, beta, mean, var))
        assert out.shape == (N, Cout, D, H, W), out.shape

        ref = cbr_reference(x, weight, gamma, beta, mean, var)
        outf = out.astype(jnp.float32)
        max_err = float(jnp.max(jnp.abs(outf - ref)))
        assert jnp.allclose(outf, ref, rtol=2e-2, atol=2e-2), (Cin, Cout, max_err)

    # CBR(n_in=4, n_out=8) on a small 3-D volume -> small-Cin (lane-dense matmul) path.
    _run_case(N=2, Cin=4, Cout=8, D=8, H=8, W=8)
    # Larger channel count -> fused depth-windowed im2col path.
    _run_case(N=1, Cin=16, Cout=16, D=8, H=8, W=8)

    print("KERNEL_OK")
</pallas_src>

<mosaic_0001>
module attributes {stable_mosaic.version = 11 : i64} {
  func.func @_matmul_bias_relu_kernel(%arg0: i32, %arg1: i32, %arg2: memref<1x128x512xbf16, #tpu.memory_space<vmem>>, %arg3: memref<8x128xbf16, #tpu.memory_space<vmem>>, %arg4: memref<8x1xf32, #tpu.memory_space<vmem>>, %arg5: memref<1x8x512xbf16, #tpu.memory_space<vmem>>) attributes {dimension_semantics = [#tpu.dimension_semantics<parallel>, #tpu.dimension_semantics<parallel>], iteration_bounds = array<i64: 2, 1>, scalar_prefetch = 0 : i64, scratch_operands = 0 : i64, tpu.core_type = #tpu.core_type<tc>, window_params = [{transform_indices = @transform_0, window_bounds = array<i64: 1, 128, 512>}, {pipeline_mode = #tpu.pipeline_mode<synchronous>, transform_indices = @transform_1, window_bounds = array<i64: 8, 128>}, {pipeline_mode = #tpu.pipeline_mode<synchronous>, transform_indices = @transform_2, window_bounds = array<i64: 8, 1>}, {transform_indices = @transform_3, window_bounds = array<i64: 1, 8, 512>}]} {
    %c0 = arith.constant 0 : index
    %c0_0 = arith.constant 0 : index
    %0 = vector.load %arg3[%c0, %c0_0] : memref<8x128xbf16, #tpu.memory_space<vmem>>, vector<8x128xbf16>
    %c0_1 = arith.constant 0 : index
    %c0_2 = arith.constant 0 : index
    %c0_3 = arith.constant 0 : index
    %1 = vector.load %arg2[%c0_1, %c0_2, %c0_3] : memref<1x128x512xbf16, #tpu.memory_space<vmem>>, vector<1x128x512xbf16>
    %2 = vector.shape_cast %1 : vector<1x128x512xbf16> to vector<128x512xbf16>
    %cst = arith.constant dense<0.000000e+00> : vector<8x512xf32>
    %3 = tpu.matmul %0, %2, %cst {dimension_numbers = #tpu.dot_dimension_numbers<[1], [0], [0], [1], [0, 0, 1, 1], [], []>} : vector<8x128xbf16>, vector<128x512xbf16>, vector<8x512xf32> -> vector<8x512xf32>
    %c0_4 = arith.constant 0 : index
    %c0_5 = arith.constant 0 : index
    %4 = vector.load %arg4[%c0_4, %c0_5] : memref<8x1xf32, #tpu.memory_space<vmem>>, vector<8x1xf32>
    %5 = vector.broadcast %4 : vector<8x1xf32> to vector<8x512xf32>
    %6 = arith.addf %3, %5 : vector<8x512xf32>
    %cst_6 = arith.constant 0.000000e+00 : f32
    %7 = vector.broadcast %cst_6 : f32 to vector<8x512xf32>
    %8 = arith.maximumf %6, %7 : vector<8x512xf32>
    %9 = arith.truncf %8 : vector<8x512xf32> to vector<8x512xbf16>
    %c0_7 = arith.constant 0 : index
    %c0_8 = arith.constant 0 : index
    %c0_9 = arith.constant 0 : index
    %10 = vector.load %arg5[%c0_7, %c0_8, %c0_9] : memref<1x8x512xbf16, #tpu.memory_space<vmem>>, vector<1x8x512xbf16>
    %11 = vector.shape_cast %10 : vector<1x8x512xbf16> to vector<8x512xbf16>
    %12 = vector.shape_cast %9 : vector<8x512xbf16> to vector<1x8x512xbf16>
    tpu.vector_store %arg5[%c0_7, %c0_8, %c0_9], %12 {strides = array<i32>} : memref<1x8x512xbf16, #tpu.memory_space<vmem>>, vector<1x8x512xbf16>,
    return
  }
  func.func @transform_0(%arg0: i32, %arg1: i32) -> (i32, i32, i32) {
    %c0_i32 = arith.constant 0 : i32
    %c0_i32_0 = arith.constant 0 : i32
    return %arg0, %c0_i32, %arg1 : i32, i32, i32
  }
  func.func @transform_1(%arg0: i32, %arg1: i32) -> (i32, i32) {
    %c0_i32 = arith.constant 0 : i32
    %c0_i32_0 = arith.constant 0 : i32
    %c0_i32_1 = arith.constant 0 : i32
    return %c0_i32, %c0_i32_0 : i32, i32
  }
  func.func @transform_2(%arg0: i32, %arg1: i32) -> (i32, i32) {
    %c0_i32 = arith.constant 0 : i32
    %c0_i32_0 = arith.constant 0 : i32
    %c0_i32_1 = arith.constant 0 : i32
    return %c0_i32, %c0_i32_0 : i32, i32
  }
  func.func @transform_3(%arg0: i32, %arg1: i32) -> (i32, i32, i32) {
    %c0_i32 = arith.constant 0 : i32
    %c0_i32_0 = arith.constant 0 : i32
    return %arg0, %c0_i32, %arg1 : i32, i32, i32
  }
}

</mosaic_0001>

<bundles_post_ra>
// kernel: _cbr_small_cin.1
= control target key start
LH: loop header
LB: loop body
LE: loop exit
PB: predicated region body
PF: predicated region fallthrough
CT: control target
= control target key end

     0   :  { %s769_s12 = smov 0   ;;  %s771_s13 = smov 0   ;;  %s846_s0 = inlined_call_operand.vmem [shape: bf16[2,128,512], index: 0, kind: input, shape index: {}]   ;;  %s847_s1 = inlined_call_operand.vmem [shape: bf16[8,128], index: 1, kind: input, shape index: {}]   ;;  %s848_s2 = inlined_call_operand.vmem [shape: f32[8,1], index: 2, kind: input, shape index: {}]   ;;  %s849_s3 = inlined_call_operand.vmem [shape: bf16[2,8,512], index: 3, kind: output, shape index: {}]  }
   0x1   :  { %s773_s14 = smov 0  }
   0x2 LB: > { %s25_s15 = sadd.s32 1, %s742_s13  ;;  %p605_p0 = scmp.ge.s32.totalorder %s746_s14, 1  ;;  %s746_s14 = sphi %s773_s14, %s13_s14   ;;  %s742_s13 = sphi %s771_s13, %s851_s13   ;;  %s738_s12 = sphi %s769_s12, %s850_s12  }
   0x3   : > { %p27_p1 = scmp.ge.s32.totalorder %s25_s15, 2  ;;  %p158_p2 = scmp.lt.s32.totalorder %s746_s14, 3 }
   0x5   : > { %s853_s15 = smov (%p27_p1, %s25_s15), 0  ;;  %p159_p3 = pnand %p605_p0, %p158_p2 }
   0x6   : > { %p191_p4 = scmp.lt.s32.totalorder (!%p159_p3), %s738_s12, 1 }
   0x7   : > { %162 = sbr.rel (%p159_p3) target bundleno = 250 (0xfa), region = 32 }
   0xc   : > { %v244_v0 = vld [vmem:[%s848_s2] sm:$0xff]  ;;  %v748_v1 = vmov 0   ;;  %s855_s12 = smov (!%p191_p4, %s738_s12), 1 }
   0xd   : > { %442 = vmatprep.mubr.bf16.mxu0 %v748_v1  ;;  %483 = vmatprep.mubr.bf16.mxu1 %v748_v1  ;;  %s646_s18 = sshll.u32 %s855_s12, 8  ;;  %v211_v34 = vld [vmem:[%s847_s1] sm:$0xf]  ;;  %s647_s24 = sshll.u32 %s855_s12, 4 }
   0xe   : > { %675 = vset.pattern.permute.xlu0 %v748_v1  ;;  %s796_s21 = scalar_lea.vmem %s846_s0, %s646_s18  ;;  %s208_s27 = scalar_lea.vmem %s849_s3, %s647_s24 }
   0xf   : > { %247 = vperm.xlu0 %675, %v244_v0   ;;  %v676_v2 = vld [vmem:[%s796_s21 + $0xe4] ss:$16 sps:$4 sm:$0xff]   ;;  %v678_v3 = vld [vmem:[%s796_s21 + $0xec] ss:$16 sps:$4 sm:$0xff]   ;;  %v680_v4 = vld [vmem:[%s796_s21 + $0xe0] ss:$16 sps:$4 sm:$0xff]  }
  0x10   : > { %410 = vmatprep.subr.bf16.mxu0 %v676_v2  ;;  %v681_v5 = vld [vmem:[%s796_s21 + $0xe8] ss:$16 sps:$4 sm:$0xff]   ;;  %451 = vmatprep.subr.bf16.mxu1 %v678_v3  ;;  %v682_v6 = vld [vmem:[%s796_s21 + $0xc4] ss:$16 sps:$4 sm:$0xff]   ;;  %v684_v7 = vld [vmem:[%s796_s21 + $0xcc] ss:$16 sps:$4 sm:$0xff]  }
  0x11   : > { %411 = vmatpush1.bf16.msra.mxu0 %v680_v4  ;;  %452 = vmatpush1.bf16.msra.mxu1 %v681_v5  ;;  %v686_v8 = vld [vmem:[%s796_s21 + $0xc0] ss:$16 sps:$4 sm:$0xff]   ;;  %v687_v9 = vld [vmem:[%s796_s21 + $0xc8] ss:$16 sps:$4 sm:$0xff]   ;;  %v688_v10 = vld [vmem:[%s796_s21 + $0xa4] ss:$16 sps:$4 sm:$0xff]  }
  0x12   : > { %412 = vmatprep.subr.bf16.mxu0 %v682_v6  ;;  %453 = vmatprep.subr.bf16.mxu1 %v684_v7  ;;  %v690_v11 = vld [vmem:[%s796_s21 + $0xac] ss:$16 sps:$4 sm:$0xff]   ;;  %v692_v12 = vld [vmem:[%s796_s21 + $0xa0] ss:$16 sps:$4 sm:$0xff]   ;;  %v693_v13 = vld [vmem:[%s796_s21 + $0xa8] ss:$16 sps:$4 sm:$0xff]  }
  0x13   : > { %v694_v14 = vld [vmem:[%s796_s21 + $0x84] ss:$16 sps:$4 sm:$0xff]   ;;  %v696_v15 = vld [vmem:[%s796_s21 + $0x8c] ss:$16 sps:$4 sm:$0xff]   ;;  %v698_v16 = vld [vmem:[%s796_s21 + $0x80] ss:$16 sps:$4 sm:$0xff]  }
  0x14   : > { %v699_v17 = vld [vmem:[%s796_s21 + $0x88] ss:$16 sps:$4 sm:$0xff]   ;;  %v700_v18 = vld [vmem:[%s796_s21 + $0x64] ss:$16 sps:$4 sm:$0xff]   ;;  %v702_v19 = vld [vmem:[%s796_s21 + $0x6c] ss:$16 sps:$4 sm:$0xff]  }
  0x15   : > { %413 = vmatpush1.bf16.msra.mxu0 %v686_v8  ;;  %454 = vmatpush1.bf16.msra.mxu1 %v687_v9  ;;  %v704_v20 = vld [vmem:[%s796_s21 + $0x60] ss:$16 sps:$4 sm:$0xff]   ;;  %v705_v21 = vld [vmem:[%s796_s21 + $0x68] ss:$16 sps:$4 sm:$0xff]   ;;  %v706_v22 = vld [vmem:[%s796_s21 + $0x44] ss:$16 sps:$4 sm:$0xff]  }
  0x16   : > { %414 = vmatprep.subr.bf16.mxu0 %v688_v10  ;;  %455 = vmatprep.subr.bf16.mxu1 %v690_v11  ;;  %v708_v23 = vld [vmem:[%s796_s21 + $0x4c] ss:$16 sps:$4 sm:$0xff]   ;;  %v710_v24 = vld [vmem:[%s796_s21 + $0x40] ss:$16 sps:$4 sm:$0xff]   ;;  %v711_v25 = vld [vmem:[%s796_s21 + $0x48] ss:$16 sps:$4 sm:$0xff]  }
  0x17   : > { %v712_v26 = vld [vmem:[%s796_s21 + $0x24] ss:$16 sps:$4 sm:$0xff]   ;;  %v714_v27 = vld [vmem:[%s796_s21 + $0x2c] ss:$16 sps:$4 sm:$0xff]   ;;  %v716_v28 = vld [vmem:[%s796_s21 + $0x20] ss:$16 sps:$4 sm:$0xff]  }
  0x18   : > { %v717_v29 = vld [vmem:[%s796_s21 + $0x28] ss:$16 sps:$4 sm:$0xff]   ;;  %v718_v30 = vld [vmem:[%s796_s21 + $0x4] ss:$16 sps:$4 sm:$0xff]   ;;  %v720_v31 = vld [vmem:[%s796_s21 + $0xc] ss:$16 sps:$4 sm:$0xff]  }
  0x19   : > { %415 = vmatpush1.bf16.msra.mxu0 %v692_v12  ;;  %456 = vmatpush1.bf16.msra.mxu1 %v693_v13  ;;  %v722_v32 = vld [vmem:[%s796_s21] ss:$16 sps:$4 sm:$0xff]   ;;  %v723_v33 = vld [vmem:[%s796_s21 + $0x8] ss:$16 sps:$4 sm:$0xff]  }
  0x1a   : > { %416 = vmatprep.subr.bf16.mxu0 %v694_v14  ;;  %457 = vmatprep.subr.bf16.mxu1 %v696_v15 }
  0x1d   : > { %417 = vmatpush1.bf16.msra.mxu0 %v698_v16  ;;  %458 = vmatpush1.bf16.msra.mxu1 %v699_v17 }
  0x1e   : > { %418 = vmatprep.subr.bf16.mxu0 %v700_v18  ;;  %459 = vmatprep.subr.bf16.mxu1 %v702_v19 }
  0x21   : > { %419 = vmatpush1.bf16.msra.mxu0 %v704_v20  ;;  %460 = vmatpush1.bf16.msra.mxu1 %v705_v21 }
  0x22   : > { %420 = vmatprep.subr.bf16.mxu0 %v706_v22  ;;  %461 = vmatprep.subr.bf16.mxu1 %v708_v23 }
  0x25   : > { %421 = vmatpush1.bf16.msra.mxu0 %v710_v24  ;;  %462 = vmatpush1.bf16.msra.mxu1 %v711_v25 }
  0x26   : > { %422 = vmatprep.subr.bf16.mxu0 %v712_v26  ;;  %463 = vmatprep.subr.bf16.mxu1 %v714_v27 }
  0x29   : > { %423 = vmatpush1.bf16.msra.mxu0 %v716_v28  ;;  %464 = vmatpush1.bf16.msra.mxu1 %v717_v29 }
  0x2a   : > { %424 = vmatprep.subr.bf16.mxu0 %v718_v30  ;;  %465 = vmatprep.subr.bf16.mxu1 %v720_v31 }
  0x2d   : > { %425 = vmatpush1.bf16.msra.mxu0 %v722_v32  ;;  %466 = vmatpush1.bf16.msra.mxu1 %v723_v33 }
  0x30   : > { %443 = vmatmul.mubr.bf16.vlgmr.msra.gmra.mxu0 %v211_v34  ;;  %484 = vmatmul.mubr.bf16.vlgmr.msra.gmra.mxu1 %v211_v34 }
  0x8a   : > { %v248_v35 = vpop.permute.xlu0 %247 }
  0xf0   : > { %v444_v36 = vpop.f32.mrf.mxu0  ;;  %v485_v37 = vpop.f32.mrf.mxu1 }
  0xf1   : > { %v445_v38 = vadd.f32 %v444_v36, %v248_v35  ;;  %v486_v39 = vadd.f32 %v485_v37, %v248_v35 }
  0xf2   : > { %v446_v40 = vpop.f32.mrf.mxu0  ;;  %v487_v41 = vpop.f32.mrf.mxu1 }
  0xf3   : > { %v447_v42 = vadd.f32 %v446_v40, %v248_v35  ;;  %v488_v43 = vadd.f32 %v487_v41, %v248_v35  ;;  %v492_v46 = vmax.f32 %v445_v38, 0.0  ;;  %v494_v47 = vmax.f32 %v486_v39, 0.0 }
  0xf4   : > { %v448_v44 = vpop.f32.mrf.mxu0  ;;  %v489_v45 = vpop.f32.mrf.mxu1 }
  0xf5   : > { %v493_v48 = vmax.f32 %v447_v42, 0.0  ;;  %v495_v49 = vmax.f32 %v488_v43, 0.0 }
  0xf6   : > { %v449_v50 = vpop.f32.mrf.mxu0  ;;  %v490_v51 = vpop.f32.mrf.mxu1 }
  0xf7   : > { %v648_v52 = vpack.c.bf16 %v493_v48, %v492_v46  ;;  %v649_v53 = vpack.c.bf16 %v495_v49, %v494_v47 }
  0xf9   : > { %512 = vst [vmem:[%s208_s27] sm:$0xff] %v648_v52  ;;  %513 = vst [vmem:[%s208_s27 + $0x8] sm:$0xff] %v649_v53 }
  0xfa PF: > { %s13_s14 = sadd.s32 1, %s746_s14   ;;  %s850_s12 = smov %s742_s13 }
  0xfb   : > { %p10_p5 = scmp.ge.s32.totalorder %s13_s14, 4   ;;  %s851_s13 = smov %s853_s15 }
  0xfd   :  { %12 = sbr.rel (!%p10_p5) target bundleno = 2 (0x2), region = 62 }

</bundles_post_ra>
